<compile_context>
chip_gen: v5e
topology: v5e:2x2
jax: 0.10.0
libtpu: 0.0.40
codegen_flags: <defaults>
</compile_context>

<pallas_src>
import jax
import jax.numpy as jnp
from jax.experimental import pallas as pl
from jax.experimental.pallas import tpu as pltpu

_LANE = 128   # vreg lane width
_SUB = 8      # vreg sublane width


def _round_up(a: int, b: int) -> int:
    return (a + b - 1) // b * b


def gaussian_kernel(size: int, sigma: float) -> jnp.ndarray:
    """1D Gaussian kernel, identical to the PyTorch reference construction."""
    x = jnp.arange(-size // 2 + 1.0, size // 2 + 1.0, dtype=jnp.float32)
    k = jnp.exp(-0.5 * (x / sigma) ** 2)
    return k / jnp.sum(k)


def _make_conv1d_kernel(taps, pad_left, tl, hc):
    """out[:, i] = sum_j taps[j] * cat[:, i + hc - pad_left + j] where
    cat = [left_halo | x_tile | right_halo].  Halos carry neighbour data (or zeros at
    the global edges), so 'same' boundary handling needs no masks / iota / select."""
    w_cat = tl + 2 * hc

    def kernel(x_ref, halo_ref, o_ref):
        halo = halo_ref[...]                                        # (TR, 2*hc) raw dtype
        cat = jnp.concatenate(                                      # (TR, tl + 2*hc) raw dtype
            [halo[:, :hc], x_ref[...], halo[:, hc:]], axis=-1)
        acc = jnp.zeros((x_ref.shape[0], tl), jnp.float32)
        for j, w in enumerate(taps):                                # K small & static -> unrolled
            off = hc - pad_left + j                                 # source lane for output lane 0
            # roll on the raw dtype (bf16 packs 2x per vreg), cast to f32 after the roll
            shifted = pltpu.roll(cat, shift=(w_cat - off) % w_cat, axis=1)
            acc = acc + shifted[:, :tl].astype(jnp.float32) * w     # scalar tap: pure VPU MAC
        o_ref[...] = acc.astype(o_ref.dtype)

    return kernel


def make_gaussian_filter_forward(filters: jnp.ndarray):
    """Build the forward fn for fixed filters (the module's (1,1,K) parameter).

    Returned fn maps (B, 1, L) -> (B, 1, L), equivalent to conv1d(signal, filters,
    padding='same') (cross-correlation, zero boundary)."""
    assert filters.ndim == 3 and filters.shape[0] == 1 and filters.shape[1] == 1
    K = int(filters.shape[-1])
    taps = tuple(float(v) for v in jax.device_get(filters).reshape(-1))
    total_pad = K - 1
    pad_left = total_pad // 2                 # torch 'same': extra zero on the right
    pad_right = total_pad - pad_left
    # halo width: >= max one-sided pad, lane-aligned (covers degenerate K >= L too)
    hc = max(_LANE, _round_up(max(pad_left, pad_right, 1), _LANE))

    def forward(signal: jnp.ndarray) -> jnp.ndarray:
        assert signal.ndim == 3
        B, C, L = signal.shape
        assert C == 1, "filters (1,1,K) imply in_channels == 1"
        R = B * C
        x = signal.reshape(R, L)
        isz = jnp.dtype(signal.dtype).itemsize

        # --- lane (L) tiling: bounds VMEM independent of L; tiles are multiples of 128
        TL_TARGET = 2048
        nl = -(-L // TL_TARGET)
        tl = max(_round_up(-(-L // nl), _LANE), hc)
        nl = -(-L // tl)
        Lp = nl * tl

        # --- row tiling: ~1.5 MiB input tile (safe on v7x 64 MiB VMEM), >= 2 grid steps
        TARGET_TILE_BYTES = 3 * 512 * 1024
        tr = (TARGET_TILE_BYTES // max(tl * isz, 1)) // _SUB * _SUB
        tr = max(_SUB, min(tr, 1024))
        tr = min(tr, _round_up(R, _SUB))
        if nl == 1 and R >= 2 * _SUB:
            tr = min(tr, _round_up(-(-R // 2), _SUB))   # megacore: keep both v7x TCs busy
        nr = -(-R // tr)

        # zero-pad L (matches the 'same' zero boundary; padded cols sliced off below)
        xp = x if Lp == L else jnp.pad(x, ((0, 0), (0, Lp - L)))

        # per-tile halo array (nl, R, 2*hc): last hc cols of the left neighbour tile and
        # first hc cols of the right neighbour tile; zeros at the global edges.
        xr = xp.reshape(R, nl, tl)
        zh = jnp.zeros((R, 1, hc), xp.dtype)
        lh = jnp.concatenate([zh, xr[:, :-1, tl - hc:]], axis=1)      # (R, nl, hc)
        rh = jnp.concatenate([xr[:, 1:, :hc], zh], axis=1)            # (R, nl, hc)
        halo = jnp.concatenate([lh, rh], axis=-1).transpose(1, 0, 2)  # (nl, R, 2*hc)

        kernel = _make_conv1d_kernel(taps, pad_left, tl, hc)

        out = pl.pallas_call(
            kernel,
            out_shape=jax.ShapeDtypeStruct((R, Lp), signal.dtype),
            grid=(nr, nl),
            in_specs=[
                pl.BlockSpec((tr, tl), lambda r, l: (r, l)),
                pl.BlockSpec((None, tr, 2 * hc), lambda r, l: (l, r, 0)),
            ],
            out_specs=pl.BlockSpec((tr, tl), lambda r, l: (r, l)),
            compiler_params=pltpu.CompilerParams(
                dimension_semantics=("parallel", "parallel"),
                vmem_limit_bytes=32 * 1024 * 1024,
            ),
            cost_estimate=pl.CostEstimate(
                flops=2 * K * R * Lp,
                transcendentals=0,
                bytes_accessed=(2 * R * Lp + nl * R * 2 * hc) * isz,
            ),
        )(xp, halo)

        out = out if Lp == L else out[:, :L]
        return out.reshape(B, C, L)

    return forward


if __name__ == "__main__":
    # Deterministic parameter init (same construction as the module __init__).
    SIZE, SIGMA = 5, 1.5
    filters = gaussian_kernel(SIZE, SIGMA).reshape(1, 1, SIZE)     # (1, 1, K)
    forward = make_gaussian_filter_forward(filters)

    # Small example input consistent with conv1d(signal, (1,1,K)): (B, C_in=1, L).
    key = jax.random.PRNGKey(0)
    signal = jax.random.normal(key, (8, 1, 256), dtype=jnp.float32)

    out = jax.jit(forward)(signal)
    out = jax.block_until_ready(out)

    # Sanity check against a pure-JAX reference ('same' cross-correlation, zero pad).
    ref = jax.lax.conv_general_dilated(
        signal, filters.astype(signal.dtype), window_strides=(1,), padding="SAME",
        dimension_numbers=("NCH", "OIH", "NCH"))
    assert out.shape == signal.shape
    err = float(jnp.max(jnp.abs(out - ref)))
    assert err < 1e-5, err
    print("KERNEL_OK")
</pallas_src>

<mosaic_0001>
module attributes {stable_mosaic.version = 11 : i64} {
  func.func @kernel(%arg0: i32, %arg1: i32, %arg2: memref<8x256xf32, #tpu.memory_space<vmem>>, %arg3: memref<1x8x256xf32, #tpu.memory_space<vmem>>, %arg4: memref<8x256xf32, #tpu.memory_space<vmem>>) attributes {dimension_semantics = [#tpu.dimension_semantics<parallel>, #tpu.dimension_semantics<parallel>], iteration_bounds = array<i64: 1, 1>, scalar_prefetch = 0 : i64, scratch_operands = 0 : i64, tpu.core_type = #tpu.core_type<tc>, window_params = [{transform_indices = @transform_0, window_bounds = array<i64: 8, 256>}, {transform_indices = @transform_1, window_bounds = array<i64: 1, 8, 256>}, {transform_indices = @transform_2, window_bounds = array<i64: 8, 256>}]} {
    %c0 = arith.constant 0 : index
    %c0_0 = arith.constant 0 : index
    %c0_1 = arith.constant 0 : index
    %0 = vector.load %arg3[%c0, %c0_0, %c0_1] : memref<1x8x256xf32, #tpu.memory_space<vmem>>, vector<1x8x256xf32>
    %1 = vector.shape_cast %0 : vector<1x8x256xf32> to vector<8x256xf32>
    %2 = vector.extract_strided_slice %1 {offsets = [0, 0], sizes = [8, 128], strides = [1, 1]} : vector<8x256xf32> to vector<8x128xf32>
    %c0_2 = arith.constant 0 : index
    %c0_3 = arith.constant 0 : index
    %3 = vector.load %arg2[%c0_2, %c0_3] : memref<8x256xf32, #tpu.memory_space<vmem>>, vector<8x256xf32>
    %4 = vector.extract_strided_slice %1 {offsets = [0, 128], sizes = [8, 128], strides = [1, 1]} : vector<8x256xf32> to vector<8x128xf32>
    %5 = tpu.concatenate %2, %3, %4 in 1 : vector<8x128xf32>, vector<8x256xf32>, vector<8x128xf32> -> vector<8x512xf32>
    %cst = arith.constant 0.000000e+00 : f32
    %6 = vector.broadcast %cst : f32 to vector<8x256xf32>
    %c386_i32 = arith.constant 386 : i32
    %7 = tpu.dynamic_rotate %5 by %c386_i32 dim 1 : vector<8x512xf32>, i32 -> vector<8x512xf32>
    %8 = vector.extract_strided_slice %7 {offsets = [0, 0], sizes = [8, 256], strides = [1, 1]} : vector<8x512xf32> to vector<8x256xf32>
    %cst_4 = arith.constant 0.12007837 : f32
    %9 = vector.broadcast %cst_4 : f32 to vector<8x256xf32>
    %10 = arith.mulf %8, %9 : vector<8x256xf32>
    %11 = arith.addf %6, %10 : vector<8x256xf32>
    %c385_i32 = arith.constant 385 : i32
    %12 = tpu.dynamic_rotate %5 by %c385_i32 dim 1 : vector<8x512xf32>, i32 -> vector<8x512xf32>
    %13 = vector.extract_strided_slice %12 {offsets = [0, 0], sizes = [8, 256], strides = [1, 1]} : vector<8x512xf32> to vector<8x256xf32>
    %cst_5 = arith.constant 0.233880743 : f32
    %14 = vector.broadcast %cst_5 : f32 to vector<8x256xf32>
    %15 = arith.mulf %13, %14 : vector<8x256xf32>
    %16 = arith.addf %11, %15 : vector<8x256xf32>
    %c384_i32 = arith.constant 384 : i32
    %17 = tpu.dynamic_rotate %5 by %c384_i32 dim 1 : vector<8x512xf32>, i32 -> vector<8x512xf32>
    %18 = vector.extract_strided_slice %17 {offsets = [0, 0], sizes = [8, 256], strides = [1, 1]} : vector<8x512xf32> to vector<8x256xf32>
    %cst_6 = arith.constant 0.292081714 : f32
    %19 = vector.broadcast %cst_6 : f32 to vector<8x256xf32>
    %20 = arith.mulf %18, %19 : vector<8x256xf32>
    %21 = arith.addf %16, %20 : vector<8x256xf32>
    %c383_i32 = arith.constant 383 : i32
    %22 = tpu.dynamic_rotate %5 by %c383_i32 dim 1 : vector<8x512xf32>, i32 -> vector<8x512xf32>
    %23 = vector.extract_strided_slice %22 {offsets = [0, 0], sizes = [8, 256], strides = [1, 1]} : vector<8x512xf32> to vector<8x256xf32>
    %cst_7 = arith.constant 0.233880743 : f32
    %24 = vector.broadcast %cst_7 : f32 to vector<8x256xf32>
    %25 = arith.mulf %23, %24 : vector<8x256xf32>
    %26 = arith.addf %21, %25 : vector<8x256xf32>
    %c382_i32 = arith.constant 382 : i32
    %27 = tpu.dynamic_rotate %5 by %c382_i32 dim 1 : vector<8x512xf32>, i32 -> vector<8x512xf32>
    %28 = vector.extract_strided_slice %27 {offsets = [0, 0], sizes = [8, 256], strides = [1, 1]} : vector<8x512xf32> to vector<8x256xf32>
    %cst_8 = arith.constant 0.12007837 : f32
    %29 = vector.broadcast %cst_8 : f32 to vector<8x256xf32>
    %30 = arith.mulf %28, %29 : vector<8x256xf32>
    %31 = arith.addf %26, %30 : vector<8x256xf32>
    %c0_9 = arith.constant 0 : index
    %c0_10 = arith.constant 0 : index
    %32 = vector.load %arg4[%c0_9, %c0_10] : memref<8x256xf32, #tpu.memory_space<vmem>>, vector<8x256xf32>
    tpu.vector_store %arg4[%c0_9, %c0_10], %31 {strides = array<i32>} : memref<8x256xf32, #tpu.memory_space<vmem>>, vector<8x256xf32>,
    return
  }
  func.func @transform_0(%arg0: i32, %arg1: i32) -> (i32, i32) {
    %c0_i32 = arith.constant 0 : i32
    return %arg0, %arg1 : i32, i32
  }
  func.func @transform_1(%arg0: i32, %arg1: i32) -> (i32, i32, i32) {
    %c0_i32 = arith.constant 0 : i32
    %c0_i32_0 = arith.constant 0 : i32
    return %arg1, %arg0, %c0_i32 : i32, i32, i32
  }
  func.func @transform_2(%arg0: i32, %arg1: i32) -> (i32, i32) {
    %c0_i32 = arith.constant 0 : i32
    return %arg0, %arg1 : i32, i32
  }
}

</mosaic_0001>

<bundles_post_ra>
// kernel: forward.1
= control target key start
LH: loop header
LB: loop body
LE: loop exit
PB: predicated region body
PF: predicated region fallthrough
CT: control target
= control target key end

     0   :  { %s83_s13 = smov 2   ;;  %s84_s16 = smov 1   ;;  %v21_v7 = vlaneseq  ;;  %s120_s1 = inlined_call_operand.vmem [shape: f32[1,8,256], index: 1, kind: input, shape index: {}]   ;;  %s121_s0 = inlined_call_operand.vmem [shape: f32[8,256], index: 0, kind: input, shape index: {}]   ;;  %s122_s2 = inlined_call_operand.vmem [shape: f32[8,256], index: 2, kind: output, shape index: {}]  }
   0x1   :  { %v11_v0 = vld [vmem:[%s120_s1] sm:$0xff]  ;;  %v14_v1 = vld [vmem:[%s121_s0 + $0x8] sm:$0xff]  ;;  %s85_s19 = smov 127   ;;  %s86_s20 = smov 126  }
   0x2   :  { %15 = vrot.lane.b32.xlu0 %v11_v0, %s83_s13  ;;  %19 = vrot.lane.b32.xlu1 %v14_v1, %s83_s13  ;;  %v13_v2 = vld [vmem:[%s121_s0] sm:$0xff]  ;;  %v12_v3 = vld [vmem:[%s120_s1 + $0x8] sm:$0xff]  ;;  %v22_v9 = vand.u32 127, %v21_v7  ;;  %v44_v27 = vmul.f32 0.2920817, %v14_v1 }
   0x3   :  { %32 = vrot.lane.b32.xlu2 %v13_v2, %s84_s16  ;;  %v43_v28 = vmul.f32 0.2920817, %v13_v2 }
   0x4   :  { %vm23_vm0 = vcmp.lt.s32.totalorder %v22_v9, 2  ;;  %vm36_vm1 = vcmp.lt.s32.totalorder %v22_v9, 1  ;;  %vm53_vm2 = vcmp.lt.s32.totalorder %v22_v9, 127  ;;  %vm66_vm3 = vcmp.lt.s32.totalorder %v22_v9, 126 }
   0xa   :  { %30 = vrot.lane.b32.xlu1 %v11_v0, %s84_s16  ;;  %17 = vrot.lane.b32.xlu0 %v13_v2, %s83_s13 }
   0xb   :  { %34 = vrot.lane.b32.xlu2 %v14_v1, %s84_s16 }
  0x12   :  { %49 = vrot.lane.b32.xlu1 %v14_v1, %s85_s19  ;;  %47 = vrot.lane.b32.xlu0 %v13_v2, %s85_s19 }
  0x13   :  { %51 = vrot.lane.b32.xlu2 %v12_v3, %s85_s19 }
  0x1a   :  { %62 = vrot.lane.b32.xlu1 %v14_v1, %s86_s20  ;;  %60 = vrot.lane.b32.xlu0 %v13_v2, %s86_s20 }
  0x1b   :  { %64 = vrot.lane.b32.xlu2 %v12_v3, %s86_s20 }
  0x5d   :  { %v33_v4 = vpop.permute.xlu2 %32 }
  0x65   :  { %v35_v8 = vpop.permute.xlu2 %34 }
  0x66   :  { %v37_v16 = vsel %vm36_vm1, %v33_v4, %v35_v8 }
  0x67   :  { %v40_v22 = vmul.f32 0.23388074, %v37_v16 }
  0x6d   :  { %v52_v12 = vpop.permute.xlu2 %51 }
  0x74   :  { %v16_v5 = vpop.permute.xlu0 %15  ;;  %v20_v6 = vpop.permute.xlu1 %19 }
  0x75   :  { %v65_v31 = vpop.permute.xlu2 %64 }
  0x7c   :  { %v31_v10 = vpop.permute.xlu1 %30  ;;  %v18_v11 = vpop.permute.xlu0 %17 }
  0x7d   :  { %v38_v13 = vsel %vm36_vm1, %v31_v10, %v33_v4  ;;  %v24_v14 = vsel %vm23_vm0, %v18_v11, %v20_v6  ;;  %v25_v15 = vsel %vm23_vm0, %v16_v5, %v18_v11 }
  0x7e   :  { %v39_v17 = vmul.f32 0.23388074, %v38_v13  ;;  %v26_v18 = vmul.f32 0.12007837, %v25_v15  ;;  %v27_v19 = vmul.f32 0.12007837, %v24_v14 }
  0x80   :  { %v41_v25 = vadd.f32 %v39_v17, %v26_v18  ;;  %v42_v26 = vadd.f32 %v40_v22, %v27_v19 }
  0x82   :  { %v46_v32 = vadd.f32 %v44_v27, %v42_v26  ;;  %v45_v33 = vadd.f32 %v43_v28, %v41_v25 }
  0x84   :  { %v50_v20 = vpop.permute.xlu1 %49  ;;  %v48_v21 = vpop.permute.xlu0 %47 }
  0x85   :  { %v54_v23 = vsel %vm53_vm2, %v50_v20, %v52_v12  ;;  %v55_v24 = vsel %vm53_vm2, %v48_v21, %v50_v20 }
  0x86   :  { %v57_v29 = vmul.f32 0.23388074, %v54_v23  ;;  %v56_v30 = vmul.f32 0.23388074, %v55_v24 }
  0x88   :  { %v59_v38 = vadd.f32 %v57_v29, %v46_v32  ;;  %v58_v39 = vadd.f32 %v56_v30, %v45_v33 }
  0x8c   :  { %v63_v34 = vpop.permute.xlu1 %62  ;;  %v61_v35 = vpop.permute.xlu0 %60 }
  0x8d   :  { %v67_v36 = vsel %vm66_vm3, %v63_v34, %v65_v31  ;;  %v68_v37 = vsel %vm66_vm3, %v61_v35, %v63_v34 }
  0x8e   :  { %v70_v40 = vmul.f32 0.12007837, %v67_v36  ;;  %v69_v41 = vmul.f32 0.12007837, %v68_v37 }
  0x90   :  { %v72_v42 = vadd.f32 %v70_v40, %v59_v38  ;;  %v71_v43 = vadd.f32 %v69_v41, %v58_v39 }
  0x92   :  { %74 = vst [vmem:[%s122_s2 + $0x8] sm:$0xff] %v72_v42 }
  0x93   :  { %73 = vst [vmem:[%s122_s2] sm:$0xff] %v71_v43 }

</bundles_post_ra>
